<compile_context>
chip_gen: v7x
topology: tpu7x:2x2x1
jax: 0.10.0
libtpu: 0.0.40
codegen_flags: <defaults>
</compile_context>

<pallas_src>
import functools

import jax
import jax.numpy as jnp
from jax import lax
from jax.experimental import pallas as pl
from jax.experimental.pallas import tpu as pltpu


def _logreg_kernel(x_ref, w_ref, b_ref, o_ref, *, tf, f_total, ragged, w_resident):
    """One (batch-tile, feature-tile) grid step of sigmoid(x @ w + b).

    Grid = (batch_tiles, feature_tiles).  The feature axis is the reduction
    (last, "arbitrary") and accumulates directly into the resident output
    block; the batch axis is "parallel" (megacore-shardable).
    """
    k = pl.program_id(1)

    @pl.when(k == 0)
    def _init():
        o_ref[...] = jnp.zeros_like(o_ref)

    x = x_ref[...]
    if ragged:
        # Last feature tile is partial: the input DMA is clipped to the array
        # bounds and leaves garbage in the tail columns of the VMEM buffer.
        # Mask x itself (garbage * zero-padded w could still be NaN).
        col = lax.broadcasted_iota(jnp.int32, x.shape, 1) + k * tf
        x = jnp.where(col < f_total, x, jnp.zeros_like(x))

    if w_resident:
        start = k * tf
        if tf % 8 == 0:
            start = pl.multiple_of(start, tf)
        w = w_ref[pl.ds(start, tf), :]
    else:
        w = w_ref[...]

    # Partial matvec for this feature tile (MXU, f32 accumulation) directly
    # into the resident f32 output block.
    o_ref[...] += jnp.dot(x, w, preferred_element_type=jnp.float32)

    @pl.when(k == pl.num_programs(1) - 1)
    def _finalize():
        z = o_ref[...] + b_ref[0]  # scalar bias from SMEM
        # sigmoid(z) = 1 / (1 + exp(-z)); exp maps to the EUP slot.
        o_ref[...] = pl.reciprocal(1.0 + jnp.exp(-z), approx=False)


def _round_up(n: int, m: int) -> int:
    return ((n + m - 1) // m) * m


@functools.partial(jax.jit, static_argnames=("block_b", "block_f"))
def logistic_regression(x, w, b, *, block_b=512, block_f=2048):
    """sigmoid(x @ w + b).  x: (B, F) f32/bf16, w: (F, 1), b: scalar -> (B, 1) f32."""
    B, F = x.shape
    w = jnp.asarray(w).reshape(F, 1).astype(x.dtype)  # MXU consumes x's dtype, accumulates f32
    b1 = jnp.asarray(b, jnp.float32).reshape(1)

    # ---- Feature tiles ----------------------------------------------------
    # Full dim when it fits one block (full-dim blocks are legal at any size),
    # otherwise 128-aligned 2048-wide tiles (~4 MiB f32 x block) to amortize
    # the fixed per-grid-step cost.  Ragged tails are masked in-kernel.
    TF = F if F <= block_f else block_f
    ragged = (F % TF) != 0
    Fp = F if not ragged else _round_up(F, TF)  # only w is padded (tiny)

    # ---- Batch tiles --------------------------------------------------------
    # Keep >=2 tiles for moderate B so the "parallel" axis can shard across
    # v7x's two TensorCores; cap at block_b for large B.
    if B <= block_b:
        TB = B if B <= 32 else _round_up(-(-B // 2), 16)
    else:
        TB = block_b

    grid = (pl.cdiv(B, TB), pl.cdiv(F, TF))

    # w's VMEM layout is lane-padded (~512 B per feature row).  Keep it
    # resident (single DMA, sliced per k step) unless that footprint gets
    # large, in which case stream (TF, 1) blocks per reduction step.
    w_resident = Fp * 512 <= (8 << 20)
    if Fp != F:
        w = jnp.pad(w, ((0, Fp - F), (0, 0)))
    if w_resident:
        w_spec = pl.BlockSpec((Fp, 1), lambda i, k: (0, 0))
    else:
        w_spec = pl.BlockSpec((TF, 1), lambda i, k: (k, 0))

    kernel = functools.partial(
        _logreg_kernel, tf=TF, f_total=F, ragged=ragged, w_resident=w_resident
    )

    out = pl.pallas_call(
        kernel,
        out_shape=jax.ShapeDtypeStruct((B, 1), jnp.float32),
        grid_spec=pltpu.PrefetchScalarGridSpec(
            num_scalar_prefetch=0,
            grid=grid,
            in_specs=[
                pl.BlockSpec((TB, TF), lambda i, k: (i, k)),        # x stream (double-buffered)
                w_spec,                                             # weights (resident or streamed)
                pl.BlockSpec(memory_space=pltpu.MemorySpace.SMEM),  # scalar bias
            ],
            # Output block index ignores k -> resident f32 accumulator.
            out_specs=pl.BlockSpec((TB, 1), lambda i, k: (i, 0)),
        ),
        compiler_params=pltpu.CompilerParams(
            # Batch tiles independent (v7x megacore); feature axis is the
            # sequential reduction into the resident output block.
            dimension_semantics=("parallel", "arbitrary"),
            # Double-buffered x (<= 8 MiB) + resident w + tiny output fits
            # comfortably; explicit raise needed above v5e's 16 MiB scoped
            # default, still safe on v7x's 64 MiB physical VMEM.
            vmem_limit_bytes=32 * 1024 * 1024,
        ),
    )(x, w, b1)

    return out


if __name__ == "__main__":
    key = jax.random.PRNGKey(0)
    kx, kw, kb = jax.random.split(key, 3)

    # Shapes consistent with the module: batch=8, n_input_features=32.
    B, F = 8, 32
    x = jax.random.normal(kx, (B, F), dtype=jnp.float32)
    bound = 1.0 / float(F) ** 0.5
    w = jax.random.uniform(kw, (F, 1), jnp.float32, -bound, bound)
    b = jax.random.uniform(kb, (), jnp.float32, -bound, bound)

    y = logistic_regression(x, w, b)
    jax.block_until_ready(y)
    y_ref = jax.nn.sigmoid(x @ w + b)
    assert y.shape == (B, 1)
    assert jnp.allclose(y, y_ref, atol=2e-3), "mismatch vs reference (single tile)"

    # Multi-tile path with ragged B and F and NO wrapper-side padding of x:
    # grid = (3, 3); partial feature tiles masked in-kernel, partial batch
    # tiles handled by the clipped output writeback.
    B2, F2 = 300, 700
    kx2, kw2, kb2 = jax.random.split(jax.random.PRNGKey(1), 3)
    x2 = jax.random.normal(kx2, (B2, F2), dtype=jnp.float32)
    bnd2 = 1.0 / float(F2) ** 0.5
    w2 = jax.random.uniform(kw2, (F2, 1), jnp.float32, -bnd2, bnd2)
    b2 = jax.random.uniform(kb2, (), jnp.float32, -bnd2, bnd2)
    y2 = logistic_regression(x2, w2, b2, block_b=128, block_f=256)
    jax.block_until_ready(y2)
    y2_ref = jax.nn.sigmoid(x2 @ w2 + b2)
    assert y2.shape == (B2, 1)
    assert jnp.allclose(y2, y2_ref, atol=2e-3), "mismatch vs reference (ragged tiled)"

    # bf16 activation path (halves HBM bytes of the bandwidth-bound x stream).
    B3 = 64
    x3 = jax.random.normal(jax.random.PRNGKey(2), (B3, F), dtype=jnp.bfloat16)
    y3 = logistic_regression(x3, w, b)
    jax.block_until_ready(y3)
    y3_ref = jax.nn.sigmoid(x3.astype(jnp.float32) @ w + b)
    assert y3.shape == (B3, 1)
    assert jnp.allclose(y3, y3_ref, atol=2e-2), "mismatch vs reference (bf16)"

    print("KERNEL_OK")
</pallas_src>

<mosaic_0001>
module attributes {stable_mosaic.version = 11 : i64} {
  func.func @_logreg_kernel(%arg0: i32, %arg1: i32, %arg2: memref<8x32xf32, #tpu.memory_space<vmem>>, %arg3: memref<32x1xf32, #tpu.memory_space<vmem>>, %arg4: memref<1xf32, #tpu.memory_space<smem>>, %arg5: memref<8x1xf32, #tpu.memory_space<vmem>>) attributes {dimension_semantics = [#tpu.dimension_semantics<parallel>, #tpu.dimension_semantics<arbitrary>], iteration_bounds = array<i64: 1, 1>, scalar_prefetch = 0 : i64, scratch_operands = 0 : i64, tpu.core_type = #tpu.core_type<tc>, window_params = [{transform_indices = @transform_0, window_bounds = array<i64: 8, 32>}, {pipeline_mode = #tpu.pipeline_mode<synchronous>, transform_indices = @transform_1, window_bounds = array<i64: 32, 1>}, {transform_indices = @transform_2, window_bounds = array<i64: 1>}, {transform_indices = @transform_3, window_bounds = array<i64: 8, 1>}]} {
    %c0_i32 = arith.constant 0 : i32
    %0 = arith.cmpi eq, %arg1, %c0_i32 : i32
    %1 = arith.extui %0 : i1 to i32
    %c0_i32_0 = arith.constant 0 : i32
    %2 = arith.cmpi ne, %1, %c0_i32_0 : i32
    scf.if %2 {
      %cst_9 = arith.constant 0.000000e+00 : f32
      %15 = vector.broadcast %cst_9 : f32 to vector<8x1xf32>
      %c0_10 = arith.constant 0 : index
      %c0_11 = arith.constant 0 : index
      %16 = vector.load %arg5[%c0_10, %c0_11] : memref<8x1xf32, #tpu.memory_space<vmem>>, vector<8x1xf32>
      tpu.vector_store %arg5[%c0_10, %c0_11], %15 {strides = array<i32>} : memref<8x1xf32, #tpu.memory_space<vmem>>, vector<8x1xf32>,
    } else {
    }
    %c0 = arith.constant 0 : index
    %c0_1 = arith.constant 0 : index
    %3 = vector.load %arg2[%c0, %c0_1] : memref<8x32xf32, #tpu.memory_space<vmem>>, vector<8x32xf32>
    %c32_i32 = arith.constant 32 : i32
    %4 = arith.muli %arg1, %c32_i32 : i32
    %5 = tpu.assume_multiple %4, 32 : i32
    %6 = arith.index_cast %5 : i32 to index
    %c0_2 = arith.constant 0 : index
    %7 = vector.load %arg3[%6, %c0_2] : memref<32x1xf32, #tpu.memory_space<vmem>>, vector<32x1xf32>
    %c0_3 = arith.constant 0 : index
    %c0_4 = arith.constant 0 : index
    %8 = vector.load %arg5[%c0_3, %c0_4] : memref<8x1xf32, #tpu.memory_space<vmem>>, vector<8x1xf32>
    %cst = arith.constant dense<0.000000e+00> : vector<8x1xf32>
    %9 = tpu.matmul %3, %7, %cst {dimension_numbers = #tpu.dot_dimension_numbers<[1], [0], [0], [1], [0, 0, 1, 1], [], []>} : vector<8x32xf32>, vector<32x1xf32>, vector<8x1xf32> -> vector<8x1xf32>
    %10 = arith.addf %8, %9 : vector<8x1xf32>
    %c0_5 = arith.constant 0 : index
    %c0_6 = arith.constant 0 : index
    %11 = vector.load %arg5[%c0_5, %c0_6] : memref<8x1xf32, #tpu.memory_space<vmem>>, vector<8x1xf32>
    tpu.vector_store %arg5[%c0_5, %c0_6], %10 {strides = array<i32>} : memref<8x1xf32, #tpu.memory_space<vmem>>, vector<8x1xf32>,
    %c0_i32_7 = arith.constant 0 : i32
    %12 = arith.cmpi eq, %arg1, %c0_i32_7 : i32
    %13 = arith.extui %12 : i1 to i32
    %c0_i32_8 = arith.constant 0 : i32
    %14 = arith.cmpi ne, %13, %c0_i32_8 : i32
    scf.if %14 {
      %c0_9 = arith.constant 0 : index
      %c0_10 = arith.constant 0 : index
      %15 = vector.load %arg5[%c0_9, %c0_10] : memref<8x1xf32, #tpu.memory_space<vmem>>, vector<8x1xf32>
      %c0_11 = arith.constant 0 : index
      %16 = memref.load %arg4[%c0_11] : memref<1xf32, #tpu.memory_space<smem>>
      %17 = vector.broadcast %16 : f32 to vector<8x1xf32>
      %18 = arith.addf %15, %17 : vector<8x1xf32>
      %cst_12 = arith.constant 0.000000e+00 : f32
      %19 = vector.broadcast %cst_12 : f32 to vector<8x1xf32>
      %20 = arith.subf %19, %18 : vector<8x1xf32>
      %21 = math.exp %20 : vector<8x1xf32>
      %cst_13 = arith.constant 1.000000e+00 : f32
      %22 = vector.broadcast %cst_13 : f32 to vector<8x1xf32>
      %23 = arith.addf %22, %21 : vector<8x1xf32>
      %24 = tpu.reciprocal %23 : vector<8x1xf32> -> vector<8x1xf32>
      %c0_14 = arith.constant 0 : index
      %c0_15 = arith.constant 0 : index
      %25 = vector.load %arg5[%c0_14, %c0_15] : memref<8x1xf32, #tpu.memory_space<vmem>>, vector<8x1xf32>
      tpu.vector_store %arg5[%c0_14, %c0_15], %24 {strides = array<i32>} : memref<8x1xf32, #tpu.memory_space<vmem>>, vector<8x1xf32>,
    } else {
    }
    return
  }
  func.func @transform_0(%arg0: i32, %arg1: i32) -> (i32, i32) {
    %c0_i32 = arith.constant 0 : i32
    return %arg0, %arg1 : i32, i32
  }
  func.func @transform_1(%arg0: i32, %arg1: i32) -> (i32, i32) {
    %c0_i32 = arith.constant 0 : i32
    %c0_i32_0 = arith.constant 0 : i32
    %c0_i32_1 = arith.constant 0 : i32
    return %c0_i32, %c0_i32_0 : i32, i32
  }
  func.func @transform_2(%arg0: i32, %arg1: i32) -> i32 {
    %c0_i32 = arith.constant 0 : i32
    %c0_i32_0 = arith.constant 0 : i32
    return %c0_i32 : i32
  }
  func.func @transform_3(%arg0: i32, %arg1: i32) -> (i32, i32) {
    %c0_i32 = arith.constant 0 : i32
    %c0_i32_0 = arith.constant 0 : i32
    return %arg0, %c0_i32 : i32, i32
  }
}

</mosaic_0001>

<bundles_post_ra>
// kernel: logistic_regression.1
= control target key start
LH: loop header
LB: loop body
LE: loop exit
PB: predicated region body
PF: predicated region fallthrough
CT: control target
= control target key end

     0   :  { %vm19_vm0 = vcmask 7168   ;;  %v153_v0 = vmov 0.0|0.0   ;;  %v154_v4 = vmov 0.0   ;;  %vm155_vm1 = vmmov 0   ;;  %s212_s1 = inlined_call_operand.vmem [shape: f32[32,1], index: 1, kind: input, shape index: {}]   ;;  %s213_s3 = inlined_call_operand.vmem [shape: f32[8,1], index: 3, kind: output, shape index: {}]   ;;  %s214_s0 = inlined_call_operand.vmem [shape: f32[8,32], index: 0, kind: input, shape index: {}]   ;;  %s215_s2 = inlined_call_operand.<no memory space> [shape: f32[1], index: 2, kind: input, shape index: {}]  }
   0x1   :  { %140 = vmatprep.subr.bf16.mxu0 %v153_v0  ;;  %v24_v1 = vld [vmem:[%s212_s1] sm:$0xff]  ;;  %v25_v2 = vld [vmem:[%s212_s1 + $0x8] sm:$0xff]  ;;  %v26_v3 = vld [vmem:[%s212_s1 + $0x10] sm:$0xff]  ;;  %20 = vst.msk [vmem:[%s213_s3] sm:$0xff] %vm19_vm0, %v154_v4  ;;  %137 = vmatprep.mubr.msk.f32.mxu0 %vm155_vm1, %v154_v4  ;;  %vm29_vm2 = vcmask 261120  }
   0x2   :  { %v141_v5 = vpack.c.bf16 %v25_v2, %v24_v1  ;;  %v27_v6 = vld [vmem:[%s212_s1 + $0x18] sm:$0xff]  ;;  %v21_v8 = vld [vmem:[%s214_s0] sm:$0xff]  ;;  %v111_v13 = vstv %s215_s2 }
   0x3   :  { %v144_v7 = vpack.c.bf16 %v27_v6, %v26_v3 }
   0x4   :  { %142 = vmatpush3.bf16.msra.mxu0 %v141_v5 }
   0x5   :  { %143 = vmatprep.subr.bf16.mxu0 %v153_v0 }
   0x8   :  { %145 = vmatpush3.bf16.msra.mxu0 %v144_v7  ;;  %v28_v9 = vld [vmem:[%s213_s3] sm:$0xff] }
   0xb   :  { %138 = vmatmul.mubr.msk.f32.vlgmr.msra.gmra.mrb[0].mxu0 %vm29_vm2, %v21_v8 }
  0xde   :  { %v99_v10 = vpop.f32.mrb[0].mxu0 }
  0xdf   :  { %v103_v11 = vadd.f32 %v99_v10, %v28_v9  ;;  %v139_v12 = vpop.f32.mrb[1].mxu0 }
  0xe1   :  { %105 = vst.msk [vmem:[%s213_s3] sm:$0xff] %vm19_vm0, %v103_v11 }
  0xe8   :  { %v109_v14 = vld [vmem:[%s213_s3] sm:$0xff] }
  0xe9   :  { %v112_v15 = vadd.f32 %v111_v13, %v109_v14 }
  0xeb   :  { %v113_v16 = vsub.f32 0.0, %v112_v15 }
  0xed   :  { %v114_v17 = vmul.f32 1.442695, %v113_v16 }
  0xef   :  { %149 = vpow2.f32 %v114_v17 }
  0xf9   :  { %v150_v18 = vpop.eup %149 }
  0xfa   :  { %v116_v19 = vadd.f32 1.0, %v150_v18 }
  0xfc   :  { %151 = vrcp.f32 %v116_v19 }
 0x106   :  { %v152_v20 = vpop.eup %151 }
 0x107   :  { %118 = vst.msk [vmem:[%s213_s3] sm:$0xff] %vm19_vm0, %v152_v20 }

</bundles_post_ra>
